<compile_context>
chip_gen: v6e
topology: v6e:2x2x1
jax: 0.10.0
libtpu: 0.0.40
codegen_flags: <defaults>
</compile_context>

<pallas_src>
import math
from functools import partial

import jax
import jax.numpy as jnp
from jax import lax
from jax.experimental import pallas as pl
from jax.experimental.pallas import tpu as pltpu


def _pe_kernel(denom_ref, o_ref, *, d_model, tile_rows):
    """Compute one (tile_rows, d_model) block of the PE table.

    denom_ref: (1, d_model) f32, denom_ref[0, j] = 10000^(2*(j//2)/d_model),
               precomputed host-side with the reference formula.
    """
    # Row (position) values for this grid step.
    row0 = (pl.program_id(0) * tile_rows).astype(jnp.float32)
    pos = row0 + lax.broadcasted_iota(
        jnp.int32, (tile_rows, d_model), 0
    ).astype(jnp.float32)

    # Same computation order as the reference: angle = position / denominator.
    angle = pos / denom_ref[...]                       # (tile_rows, d_model)

    # Even columns -> sin, odd columns -> cos (matches stack+flatten interleave).
    col = lax.broadcasted_iota(jnp.int32, (tile_rows, d_model), 1)
    is_even = (col & 1) == 0
    # Store-bound kernel: computing both transcendentals is free EUP filler,
    # and keeps values bit-close to the reference.
    o_ref[...] = jnp.where(is_even, jnp.sin(angle), jnp.cos(angle))


def _choose_tile_rows(
    d_model: int,
    max_sequence_length: int,
    *,
    vmem_budget_bytes: int = 4 << 20,      # per output buffer (double-buffered)
    single_block_threshold: int = 2 << 20,  # whole-table-in-one-block cutoff
) -> int:
    """Row-tile selection (d_model is never split -> lane-dense stores)."""
    bytes_per_row = d_model * 4
    total_bytes = bytes_per_row * max_sequence_length
    if total_bytes <= single_block_threshold:
        # One full-array block: exempt from the 8-divisibility rule, no masked
        # partial writeback, no per-step pipeline overhead.  Covers the module
        # default (100, 512) == 200 KiB.
        return max_sequence_length
    # Tiled path: largest multiple-of-8 row tile within the per-buffer budget,
    # but at least 2 grid steps so the "parallel" row axis can shard across
    # both TensorCores on v7x.
    rows = min(vmem_budget_bytes // bytes_per_row,
               pl.cdiv(max_sequence_length, 2))
    rows = max(8, (rows // 8) * 8)
    return int(rows)


def positional_encoding(d_model: int, max_sequence_length: int,
                        tile_rows: int | None = None):
    """Pallas wrapper mirroring PositionalEncoding.forward()."""
    assert d_model % 2 == 0, "PositionalEncoding requires an even d_model"
    if tile_rows is None:
        tile_rows = _choose_tile_rows(d_model, max_sequence_length)

    # Host-side frequency table, computed with the exact reference formula and
    # interleaved to full width: denom[0, 2k] = denom[0, 2k+1] = 10000^(2k/d).
    even_i = jnp.arange(0, d_model, 2, dtype=jnp.float32)
    denom_half = jnp.power(jnp.float32(10000.0), even_i / jnp.float32(d_model))
    denom = jnp.repeat(denom_half, 2).reshape(1, d_model).astype(jnp.float32)

    grid = (pl.cdiv(max_sequence_length, tile_rows),)
    kernel = partial(_pe_kernel, d_model=d_model, tile_rows=tile_rows)
    return pl.pallas_call(
        kernel,
        out_shape=jax.ShapeDtypeStruct(
            (max_sequence_length, d_model), jnp.float32),
        grid=grid,
        in_specs=[pl.BlockSpec((1, d_model), lambda i: (0, 0))],
        out_specs=pl.BlockSpec((tile_rows, d_model), lambda i: (i, 0)),
        compiler_params=pltpu.CompilerParams(
            dimension_semantics=("parallel",),
            vmem_limit_bytes=32 << 20,
        ),
    )(denom)


def positional_encoding_ref(d_model: int, max_sequence_length: int):
    """Pure-JAX reference mirroring the torch forward exactly."""
    even_i = jnp.arange(0, d_model, 2, dtype=jnp.float32)
    denominator = jnp.power(10000.0, even_i / d_model)
    position = jnp.arange(max_sequence_length, dtype=jnp.float32).reshape(
        max_sequence_length, 1
    )
    even_pe = jnp.sin(position / denominator)
    odd_pe = jnp.cos(position / denominator)
    stacked = jnp.stack([even_pe, odd_pe], axis=2)
    return stacked.reshape(max_sequence_length, d_model)


if __name__ == "__main__":
    # The module has no tensor inputs / learnable parameters; PRNGKey(0) kept
    # only to satisfy the deterministic-setup convention (unused).
    _ = jax.random.PRNGKey(0)

    # Tolerance note: kernel and reference share the identical denominator and
    # computation order; residual differences are f32 ulps from sin/cos range
    # reduction at |angle| up to ~2e2, i.e. O(1e-5).  1e-4 gives safe margin.
    ATOL = RTOL = 1e-4

    # 1) Tiny smoke test (d_model < 128 lanes, single full block).
    pe_s = jax.block_until_ready(positional_encoding(32, 16))
    ref_s = positional_encoding_ref(32, 16)
    assert pe_s.shape == (16, 32) and pe_s.dtype == jnp.float32
    assert jnp.allclose(pe_s, ref_s, atol=ATOL, rtol=RTOL)

    # 2) Module defaults (d_model=512, max_sequence_length=100): single
    #    full-array block, lane-dense unmasked stores, grid=(1,).
    pe_d = jax.block_until_ready(positional_encoding(512, 100))
    ref_d = positional_encoding_ref(512, 100)
    assert pe_d.shape == (100, 512)
    assert jnp.allclose(pe_d, ref_d, atol=ATOL, rtol=RTOL)

    # 3) Forced multi-step grid with a partial last block (exercises the tiled
    #    path used for large tables): grid=(4,), last block 8/64 rows valid.
    pe_t = jax.block_until_ready(positional_encoding(128, 200, tile_rows=64))
    ref_t = positional_encoding_ref(128, 200)
    assert pe_t.shape == (200, 128)
    assert jnp.allclose(pe_t, ref_t, atol=ATOL, rtol=RTOL)

    print("KERNEL_OK")
</pallas_src>

<mosaic_0001>
module attributes {stable_mosaic.version = 11 : i64} {
  func.func @_pe_kernel(%arg0: i32, %arg1: memref<1x32xf32, #tpu.memory_space<vmem>>, %arg2: memref<16x32xf32, #tpu.memory_space<vmem>>) attributes {dimension_semantics = [#tpu.dimension_semantics<parallel>], iteration_bounds = array<i64: 1>, scalar_prefetch = 0 : i64, scratch_operands = 0 : i64, tpu.core_type = #tpu.core_type<tc>, window_params = [{pipeline_mode = #tpu.pipeline_mode<synchronous>, transform_indices = @transform_0, window_bounds = array<i64: 1, 32>}, {transform_indices = @transform_1, window_bounds = array<i64: 16, 32>}]} {
    %c16_i32 = arith.constant 16 : i32
    %0 = arith.muli %arg0, %c16_i32 : i32
    %1 = arith.sitofp %0 : i32 to f32
    %2 = tpu.iota {dimensions = array<i32: 0>} : vector<16x32xi32>
    %3 = arith.sitofp %2 : vector<16x32xi32> to vector<16x32xf32>
    %4 = vector.broadcast %1 : f32 to vector<16x32xf32>
    %5 = arith.addf %4, %3 : vector<16x32xf32>
    %c0 = arith.constant 0 : index
    %c0_0 = arith.constant 0 : index
    %6 = vector.load %arg1[%c0, %c0_0] : memref<1x32xf32, #tpu.memory_space<vmem>>, vector<1x32xf32>
    %7 = vector.broadcast %6 : vector<1x32xf32> to vector<16x32xf32>
    %8 = arith.divf %5, %7 : vector<16x32xf32>
    %9 = tpu.iota {dimensions = array<i32: 1>} : vector<16x32xi32>
    %c1_i32 = arith.constant 1 : i32
    %10 = vector.broadcast %c1_i32 : i32 to vector<16x32xi32>
    %11 = arith.andi %9, %10 : vector<16x32xi32>
    %c0_i32 = arith.constant 0 : i32
    %12 = vector.broadcast %c0_i32 : i32 to vector<16x32xi32>
    %13 = arith.cmpi eq, %11, %12 : vector<16x32xi32>
    %14 = math.sin %8 : vector<16x32xf32>
    %15 = math.cos %8 : vector<16x32xf32>
    %16 = arith.select %13, %14, %15 : vector<16x32xi1>, vector<16x32xf32>
    %c0_1 = arith.constant 0 : index
    %c0_2 = arith.constant 0 : index
    %17 = vector.load %arg2[%c0_1, %c0_2] : memref<16x32xf32, #tpu.memory_space<vmem>>, vector<16x32xf32>
    tpu.vector_store %arg2[%c0_1, %c0_2], %16 {strides = array<i32>} : memref<16x32xf32, #tpu.memory_space<vmem>>, vector<16x32xf32>,
    return
  }
  func.func @transform_0(%arg0: i32) -> (i32, i32) {
    %c0_i32 = arith.constant 0 : i32
    %c0_i32_0 = arith.constant 0 : i32
    %c0_i32_1 = arith.constant 0 : i32
    return %c0_i32, %c0_i32_0 : i32, i32
  }
  func.func @transform_1(%arg0: i32) -> (i32, i32) {
    %c0_i32 = arith.constant 0 : i32
    %c0_i32_0 = arith.constant 0 : i32
    return %arg0, %c0_i32 : i32, i32
  }
}

</mosaic_0001>

<bundles_post_ra>
// kernel: tpu_custom_call.1
= control target key start
LH: loop header
LB: loop body
LE: loop exit
PB: predicated region body
PF: predicated region fallthrough
CT: control target
= control target key end

     0   :  { %6 = vsyncpa [#allocation3], 0  ;;  %s678_s0 = inlined_call_operand.hbm [shape: f32[1,32], index: 0, kind: input, shape index: {}]   ;;  %s679_s1 = inlined_call_operand.hbm [shape: f32[16,32], index: 1, kind: output, shape index: {}]  }
   0x1   :  { %7 = vsyncpa [#allocation4], 0  ;;  %s570_s6 = smov [#allocation2]  }
   0x2   :  { %s14_s7 = sshll.u32 %s570_s6, 4  ;;  %s15_s7 = int_to_ptr.vmem [resolvable:$true] %s14_s7 }
   0x3   :  { %s534_s8 = scalar_lea.vmem %s15_s7, 16  ;;  %s538_s9 = scalar_lea.vmem %s15_s7, 32 }
   0x4   :  { %p535_p0 = scmp.ne.s32.totalorder %s15_s7, %s534_s8  ;;  %p539_p1 = scmp.lt.s32.totalorder %s15_s7, %s15_s7 }
   0x5   :  { %p540_p2 = scmp.lt.s32.totalorder %s538_s9, %s534_s8 }
   0x7   :  { %p541_p3 = por %p540_p2, %p539_p1 }
   0x9   :  { %p542_p4 = pnand %p541_p3, %p535_p0 }
   0xb   :  { %545 = shalt.err (!%p542_p4)
}
   0xc   :  { %17 = dma.hbm_to_vmem [thread:$0]  %s678_s0, 16, %s15_s7, [#allocation3]  }
   0xd   :  { %566 = dma.done.wait [#allocation3], 16  }
   0xe   :  { %567 = vsyncadd [#allocation3], 4294967280  ;;  %v23_v0 = vlaneseq  ;;  %v481_v1 = vld [vmem:[#allocation2] ss:$0 sm:$0xff]  ;;  %v571_v31 = vmov 683565275  }
   0xf   :  { %516 = vrcp.f32 %v481_v1  ;;  %v572_v33 = vmov 2475754826   ;;  %v573_v35 = vmov 2131351028   ;;  %v574_v37 = vmov 2102212464  }
  0x10   :  { %v24_v2 = vshrl.u32 %v23_v0, 7  ;;  %v575_v39 = vmov 920167782   ;;  %v576_v47 = vmov 1326507024   ;;  %s577_s0 = smov [#allocation5]  }
  0x11   :  { %s469_s12 = sshll.u32 %s577_s0, 4  ;;  %s470_s12 = int_to_ptr.vmem [resolvable:$true] %s469_s12 }
  0x12   :  { %v25_v3 = vadd.s32 8, %v24_v2  ;;  %v26_v4 = vcvt.s32.f32 %v24_v2  ;;  %s546_s13 = scalar_lea.vmem %s470_s12, 256  ;;  %p551_p6 = scmp.lt.s32.totalorder %s470_s12, %s470_s12 }
  0x13   :  { %p547_p5 = scmp.ne.s32.totalorder %s470_s12, %s546_s13  ;;  %p552_p7 = scmp.lt.s32.totalorder %s546_s13, %s546_s13 }
  0x14   :  { %v27_v5 = vcvt.s32.f32 %v25_v3 }
  0x15   :  { %p553_p8 = por %p552_p7, %p551_p6 }
  0x17   :  { %p554_p9 = pnand %p553_p8, %p547_p5 }
  0x1c   :  { %v517_v6 = vpop.eup %516 }
  0x1d   :  { %v594_v7 = vmul.f32 %v517_v6, %v26_v4  ;;  %v596_v8 = vmul.f32 %v517_v6, %v27_v5 }
  0x1f   :  { %v45_v9 = vand.u32 2147483647, %v594_v7  ;;  %v48_v10 = vand.u32 2139095040, %v594_v7  ;;  %v152_v11 = vand.u32 2139095040, %v596_v8  ;;  %v149_v12 = vand.u32 2147483647, %v596_v8 }
  0x20   :  { %vm47_vm14 = vcmp.lt.s32.totalorder %v594_v7, 0 }
  0x21   :  { %v49_v13 = vshrl.u32 %v48_v10, 23  ;;  %v52_v14 = vand.u32 8388607, %v45_v9  ;;  %v153_v15 = vshrl.u32 %v152_v11, 23  ;;  %v156_v16 = vand.u32 8388607, %v149_v12 }
  0x22   :  { %vm46_vm15 = vcmp.le.f32.partialorder %v45_v9, 0.7853982 }
  0x23   :  { %v482_v17 = vadd.s32 4294967169, %v49_v13  ;;  %v486_v18 = vadd.s32 4294967169, %v153_v15  ;;  %v53_v20 = vor.u32 8388608, %v52_v14  ;;  %v157_v22 = vor.u32 8388608, %v156_v16 }
  0x25   :  { %v55_v19 = vadd.s32 1, %v482_v17  ;;  %v159_v21 = vadd.s32 1, %v486_v18  ;;  %v606_v27 = vshll.u32 %v53_v20, 8  ;;  %v608_v29 = vshll.u32 %v157_v22, 8 }
  0x27   :  { %vm56_vm0 = vcmp.gt.s32.totalorder %v55_v19, 0  ;;  %vm160_vm1 = vcmp.gt.s32.totalorder %v159_v21, 0 }
  0x28   :  { %v57_v23 = vsel %vm56_vm0, %v55_v19, 0  ;;  %v161_v26 = vsel %vm160_vm1, %v159_v21, 0  ;;  %vm151_vm0 = vcmp.lt.s32.totalorder %v596_v8, 0  ;;  %vm150_vm1 = vcmp.le.f32.partialorder %v149_v12, 0.7853982 }
  0x29   :  { %v58_v24 = vshrl.u32 %v57_v23, 5  ;;  %v59_v25 = vand.u32 31, %v57_v23  ;;  %v163_v28 = vand.u32 31, %v161_v26  ;;  %v610_v41 = vshrl.u32 %v161_v26, 5 }
  0x2b   :  { %v60_v30 = vsub.s32 32, %v59_v25  ;;  %v62_v32 = vshll.u32 %v571_v31, %v59_v25  ;;  %v65_v34 = vshll.u32 %v572_v33, %v59_v25  ;;  %v68_v36 = vshll.u32 %v573_v35, %v59_v25 }
  0x2c   :  { %v71_v38 = vshll.u32 %v574_v37, %v59_v25  ;;  %v74_v40 = vshll.u32 %v575_v39, %v59_v25  ;;  %vm77_vm2 = vcmp.lt.s32.totalorder %v58_v24, 1  ;;  %vm78_vm3 = vcmp.lt.s32.totalorder %v58_v24, 2 }
  0x2d   :  { %v61_v42 = vshrl.u32 %v571_v31, %v60_v30  ;;  %v63_v43 = vshrl.u32 %v572_v33, %v60_v30  ;;  %v66_v44 = vshrl.u32 %v573_v35, %v60_v30  ;;  %v69_v45 = vshrl.u32 %v574_v37, %v60_v30 }
  0x2e   :  { %v72_v46 = vshrl.u32 %v575_v39, %v60_v30  ;;  %v75_v48 = vshrl.u32 %v576_v47, %v60_v30  ;;  %vm80_vm4 = vcmp.lt.s32.totalorder %v58_v24, 4  ;;  %v164_v52 = vsub.s32 32, %v163_v28 }
  0x2f   :  { %v64_v49 = vor.u32 %v63_v43, %v62_v32  ;;  %v67_v50 = vor.u32 %v66_v44, %v65_v34  ;;  %v70_v51 = vor.u32 %v69_v45, %v68_v36  ;;  %vm79_vm5 = vcmp.lt.s32.totalorder %v58_v24, 3 }
  0x30   :  { %v73_v53 = vor.u32 %v72_v46, %v71_v38  ;;  %v76_v54 = vor.u32 %v75_v48, %v74_v40  ;;  %v166_v55 = vshll.u32 %v571_v31, %v163_v28  ;;  %v169_v63 = vshll.u32 %v572_v33, %v163_v28 }
  0x31   :  { %v81_v56 = vsel %vm77_vm2, %v61_v42, %v64_v49  ;;  %v82_v57 = vsel %vm80_vm4, %v70_v51, 2102212464  ;;  %v85_v58 = vsel %vm77_vm2, %v64_v49, %v67_v50  ;;  %v89_v59 = vsel %vm77_vm2, %v67_v50, %v70_v51 }
  0x32   :  { %v83_v60 = vsel %vm79_vm5, %v67_v50, %v82_v57  ;;  %v86_v61 = vsel %vm80_vm4, %v73_v53, 920167782  ;;  %v90_v62 = vsel %vm80_vm4, %v76_v54, 1326507024  ;;  %v165_v3 = vshrl.u32 %v571_v31, %v164_v52 }
  0x33   :  { %v87_v1 = vsel %vm79_vm5, %v70_v51, %v86_v61  ;;  %v91_v2 = vsel %vm79_vm5, %v73_v53, %v90_v62  ;;  %v167_v4 = vshrl.u32 %v572_v33, %v164_v52  ;;  %v84_v5 = vsel %vm78_vm3, %v81_v56, %v83_v60 }
  0x34   :  { %v88_v6 = vsel %vm78_vm3, %v85_v58, %v87_v1  ;;  %v92_v10 = vsel %vm78_vm3, %v89_v59, %v91_v2  ;;  %v170_v11 = vshrl.u32 %v573_v35, %v164_v52  ;;  %v172_v19 = vshll.u32 %v573_v35, %v163_v28 }
  0x35   :  { %v619_v13 = vmul.u32.u64.low %v606_v27, %v92_v10  ;;  %v620_v14 = vmul.u32.u64.high %v606_v27, %v92_v10, %v619_v13  ;;  %v623_v15 = vmul.u32.u64.low %v606_v27, %v88_v6  ;;  %v624_v16 = vmul.u32.u64.high %v606_v27, %v88_v6, %v623_v15 }
  0x36   :  { %v168_v17 = vor.u32 %v167_v4, %v166_v55  ;;  %v171_v18 = vor.u32 %v170_v11, %v169_v63  ;;  %v173_v20 = vshrl.u32 %v574_v37, %v164_v52  ;;  %v175_v21 = vshll.u32 %v574_v37, %v163_v28 }
  0x37   :  { %v176_v22 = vshrl.u32 %v575_v39, %v164_v52  ;;  %v178_v23 = vshll.u32 %v575_v39, %v163_v28  ;;  %v179_v25 = vshrl.u32 %v576_v47, %v164_v52  ;;  %v100_v24 = vmul.u32 %v606_v27, %v84_v5 }
  0x38   :  { %v174_v26 = vor.u32 %v173_v20, %v172_v19  ;;  %vm181_vm6 = vcmp.lt.s32.totalorder %v610_v41, 1  ;;  %vm182_vm7 = vcmp.lt.s32.totalorder %v610_v41, 2  ;;  %vm102_vm8 = vc.u32 %v620_v14, %v623_v15 }
  0x39   :  { %v103_v30 = vadd.s32 1, %v624_v16  ;;  %v177_v31 = vor.u32 %v176_v22, %v175_v21  ;;  %vm183_vm9 = vcmp.lt.s32.totalorder %v610_v41, 3  ;;  %v180_v32 = vor.u32 %v179_v25, %v178_v23 }
  0x3a   :  { %vm184_vm10 = vcmp.lt.s32.totalorder %v610_v41, 4  ;;  %v185_v33 = vsel %vm181_vm6, %v165_v3, %v168_v17  ;;  %v189_v28 = vsel %vm181_vm6, %v168_v17, %v171_v18  ;;  %v193_v36 = vsel %vm181_vm6, %v171_v18, %v174_v26 }
  0x3b   :  { %v104_v34 = vsel %vm102_vm8, %v103_v30, %v624_v16  ;;  %v186_v27 = vsel %vm184_vm10, %v174_v26, 2102212464  ;;  %v190_v35 = vsel %vm184_vm10, %v177_v31, 920167782  ;;  %v194_v40 = vsel %vm184_vm10, %v180_v32, 1326507024 }
  0x3c   :  { %v105_v37 = vadd.s32 %v104_v34, %v100_v24  ;;  %v187_v38 = vsel %vm183_vm9, %v171_v18, %v186_v27  ;;  %v191_v39 = vsel %vm183_vm9, %v174_v26, %v190_v35  ;;  %v195_v44 = vsel %vm183_vm9, %v177_v31, %v194_v40 }
  0x3d   :  { %v188_v42 = vsel %vm182_vm7, %v185_v33, %v187_v38  ;;  %v192_v43 = vsel %vm182_vm7, %v189_v28, %v191_v39  ;;  %v196_v46 = vsel %vm182_vm7, %v193_v36, %v195_v44  ;;  %v101_v2 = vadd.s32 %v623_v15, %v620_v14 }
  0x3e   :  { %v106_v45 = vadd.s32 536870912, %v105_v37  ;;  %v641_v47 = vmul.u32.u64.low %v608_v29, %v192_v43  ;;  %v642_v48 = vmul.u32.u64.high %v608_v29, %v192_v43, %v641_v47  ;;  %v204_v52 = vmul.u32 %v608_v29, %v188_v42 }
  0x3f   :  { %v645_v49 = vmul.u32.u64.low %v608_v29, %v196_v46  ;;  %v646_v50 = vmul.u32.u64.high %v608_v29, %v196_v46, %v645_v49  ;;  %vm137_vm8 = vweird.f32 %v594_v7  ;;  %vm461_vm10 = vcmask 261120  }
  0x40   :  { %v107_v51 = vshrl.u32 %v106_v45, 30  ;;  %v207_v54 = vadd.s32 1, %v642_v48 }
  0x41   :  { %vm206_vm11 = vc.u32 %v646_v50, %v641_v47  ;;  %v205_v22 = vadd.s32 %v641_v47, %v646_v50 }
  0x42   :  { %v108_v53 = vshll.u32 %v107_v51, 30  ;;  %v208_v41 = vsel %vm206_vm11, %v207_v54, %v642_v48  ;;  %v131_v30 = vsub.s32 4, %v107_v51  ;;  %v42_v48 = vand.u32 127, %v23_v0 }
  0x43   :  { %v209_v56 = vadd.s32 %v208_v41, %v204_v52 }
  0x44   :  { %v109_v55 = vsub.s32 %v105_v37, %v108_v53  ;;  %v132_v35 = vsel %vm47_vm14, %v131_v30, %v107_v51  ;;  %v43_v53 = vand.u32 1, %v42_v48 }
  0x45   :  { %v210_v58 = vadd.s32 536870912, %v209_v56  ;;  %v134_v40 = vsel %vm46_vm15, 0, %v132_v35 }
  0x46   :  { %v111_v57 = vsub.s32 0, %v109_v55  ;;  %v138_v44 = vadd.s32 3, %v134_v40  ;;  %v346_v50 = vand.u32 3, %v134_v40  ;;  %vm664_vm9 = vcmp.eq.s32.totalorder %v43_v53, 0 }
  0x47   :  { %v211_v60 = vshrl.u32 %v210_v58, 30 }
  0x48   :  { %v483_v59 = vmin.u32 %v111_v57, %v109_v55  ;;  %v139_v49 = vand.u32 3, %v138_v44  ;;  %vm351_vm3 = vcmp.eq.s32.totalorder %v346_v50, 2  ;;  %vm348_vm5 = vcmp.eq.s32.totalorder %v346_v50, 0 }
  0x49   :  { %v212_v62 = vshll.u32 %v211_v60, 30  ;;  %v235_v43 = vsub.s32 4, %v211_v60  ;;  %vm347_vm7 = vcmp.lt.s32.totalorder %v346_v50, 2 }
  0x4a   :  { %v113_v61 = vclz %v483_v59  ;;  %vm144_vm2 = vcmp.eq.s32.totalorder %v139_v49, 2  ;;  %vm141_vm4 = vcmp.eq.s32.totalorder %v139_v49, 0  ;;  %vm140_vm6 = vcmp.lt.s32.totalorder %v139_v49, 2 }
  0x4b   :  { %v213_v1 = vsub.s32 %v209_v56, %v212_v62  ;;  %v236_v46 = vsel %vm151_vm0, %v235_v43, %v211_v60 }
  0x4c   :  { %v484_v63 = vadd.s32 4294967294, %v113_v61  ;;  %v238_v51 = vsel %vm150_vm1, 0, %v236_v46 }
  0x4d   :  { %v215_v3 = vsub.s32 0, %v213_v1  ;;  %v242_v12 = vadd.s32 3, %v238_v51 }
  0x4e   :  { %vm485_vm12 = vcmp.lt.s32.totalorder %v484_v63, 0 }
  0x4f   :  { %v116_v29 = vsel %vm485_vm12, 0, %v484_v63  ;;  %v487_v10 = vmin.u32 %v215_v3, %v213_v1  ;;  %v243_v62 = vand.u32 3, %v242_v12  ;;  %v449_v63 = vand.u32 3, %v238_v51 }
  0x50   :  { %v117_v4 = vsub.s32 32, %v116_v29  ;;  %v118_v5 = vshll.u32 %v109_v55, %v116_v29  ;;  %v121_v6 = vsub.s32 4294967266, %v116_v29 }
  0x51   :  { %v217_v16 = vclz %v487_v10  ;;  %vm248_vm11 = vcmp.eq.s32.totalorder %v243_v62, 2  ;;  %vm454_vm12 = vcmp.eq.s32.totalorder %v449_v63, 2 }
  0x52   :  { %v119_v11 = vshrl.u32 %v101_v2, %v117_v4  ;;  %v122_v13 = vadd.s32 127, %v121_v6 }
  0x53   :  { %v488_v19 = vadd.s32 4294967294, %v217_v16 }
  0x54   :  { %v120_v17 = vor.u32 %v119_v11, %v118_v5  ;;  %v123_v18 = vshll.u32 %v122_v13, 23 }
  0x55   :  { %vm489_vm13 = vcmp.lt.s32.totalorder %v488_v19, 0 }
  0x56   :  { %v124_v20 = vor.u32 4788187, %v123_v18  ;;  %v127_v21 = vcvt.s32.f32 %v120_v17  ;;  %v220_v14 = vsel %vm489_vm13, 0, %v488_v19  ;;  %vm245_vm13 = vcmp.eq.s32.totalorder %v243_v62, 0 }
  0x57   :  { %v221_v15 = vsub.s32 32, %v220_v14  ;;  %v222_v25 = vshll.u32 %v213_v1, %v220_v14  ;;  %v225_v24 = vsub.s32 4294967266, %v220_v14 }
  0x58   :  { %v125_v23 = vand.u32 2147483647, %v124_v20 }
  0x59   :  { %v223_v31 = vshrl.u32 %v205_v22, %v221_v15  ;;  %v226_v32 = vadd.s32 127, %v225_v24 }
  0x5a   :  { %v128_v26 = vmul.f32 %v127_v21, %v125_v23 }
  0x5b   :  { %v224_v28 = vor.u32 %v223_v31, %v222_v25  ;;  %v227_v34 = vshll.u32 %v226_v32, 23 }
  0x5c   :  { %v129_v33 = vxor.u32 2147483648, %v128_v26 }
  0x5d   :  { %v228_v37 = vor.u32 4788187, %v227_v34  ;;  %v231_v38 = vcvt.s32.f32 %v224_v28 }
  0x5e   :  { %v130_v27 = vsel %vm47_vm14, %v129_v33, %v128_v26  ;;  %vm451_vm14 = vcmp.eq.s32.totalorder %v449_v63, 0 }
  0x5f   :  { %v133_v36 = vsel %vm46_vm15, %v594_v7, %v130_v27  ;;  %v229_v39 = vand.u32 2147483647, %v228_v37  ;;  %vm244_vm15 = vcmp.lt.s32.totalorder %v243_v62, 2 }
  0x60   :  { %518 = vcosq.f32 %v133_v36 }
  0x61   :  { %520 = vsinq.f32 %v133_v36  ;;  %v232_v42 = vmul.f32 %v231_v38, %v229_v39 }
  0x63   :  { %v233_v9 = vxor.u32 2147483648, %v232_v42 }
  0x65   :  { %v234_v45 = vsel %vm151_vm0, %v233_v9, %v232_v42  ;;  %vm450_vm0 = vcmp.lt.s32.totalorder %v449_v63, 2 }
  0x66   :  { %v237_v47 = vsel %vm150_vm1, %v596_v8, %v234_v45  ;;  %vm241_vm1 = vweird.f32 %v596_v8 }
  0x67   :  { %522 = vcosq.f32 %v237_v47 }
  0x68   :  { %524 = vsinq.f32 %v237_v47 }
  0x6d   :  { %v519_v52 = vpop.eup %518 }
  0x6e   :  { %v521_v54 = vpop.eup %520  ;;  %v145_v55 = vxor.u32 2147483648, %v519_v52 }
  0x6f   :  { %v142_v41 = vxor.u32 2147483648, %v521_v54 }
  0x70   :  { %v146_v0 = vsel %vm144_vm2, %v145_v55, %v521_v54  ;;  %v353_v56 = vsel %vm351_vm3, %v145_v55, %v521_v54 }
  0x71   :  { %v143_v58 = vsel %vm141_vm4, %v519_v52, %v142_v41  ;;  %v350_v59 = vsel %vm348_vm5, %v519_v52, %v142_v41 }
  0x72   :  { %v147_v60 = vsel %vm140_vm6, %v143_v58, %v146_v0  ;;  %v354_v61 = vsel %vm347_vm7, %v350_v59, %v353_v56 }
  0x73   :  { %v148_v1 = vsel %vm137_vm8, nan, %v147_v60  ;;  %v355_v2 = vsel %vm137_vm8, nan, %v354_v61 }
  0x74   :  { %v459_v29 = vsel %vm664_vm9, %v148_v1, %v355_v2  ;;  %v523_v7 = vpop.eup %522 }
  0x75   :  { %462 = vst.msk [vmem:[#allocation5] sm:$0xff] %vm461_vm10, %v459_v29  ;;  %v525_v3 = vpop.eup %524  ;;  %v249_v4 = vxor.u32 2147483648, %v523_v7 }
  0x76   :  { %v246_v5 = vxor.u32 2147483648, %v525_v3 }
  0x77   :  { %v250_v6 = vsel %vm248_vm11, %v249_v4, %v525_v3  ;;  %v456_v10 = vsel %vm454_vm12, %v249_v4, %v525_v3 }
  0x78   :  { %v247_v11 = vsel %vm245_vm13, %v523_v7, %v246_v5  ;;  %v453_v13 = vsel %vm451_vm14, %v523_v7, %v246_v5 }
  0x79   :  { %v251_v16 = vsel %vm244_vm15, %v247_v11, %v250_v6  ;;  %v457_v17 = vsel %vm450_vm0, %v453_v13, %v456_v10 }
  0x7a   :  { %v252_v18 = vsel %vm241_vm1, nan, %v251_v16  ;;  %v458_v19 = vsel %vm241_vm1, nan, %v457_v17 }
  0x7b   :  { %v460_v20 = vsel %vm664_vm9, %v252_v18, %v458_v19 }
  0x7c   :  { %463 = vst.msk [vmem:[#allocation5 + $0x8] sm:$0xff] %vm461_vm10, %v460_v20 }
  0x7d   :  { %557 = shalt.err (!%p554_p9)
}
  0x7e   :  { %s578_s14 = smov 128   ;;  %s579_s15 = smov 8  }
  0x7f   :  { %475 = dma.vmem_to_hbm [thread:$0]  %s470_s12, 256, %s679_s1, [#allocation4], %s578_s14, %s578_s14, %s579_s15  }
  0x80   :  { %568 = dma.done.wait [#allocation4], 256  }
  0x81   :  { %569 = vsyncadd [#allocation4], 4294967040 }
  0x82   :  { %479 = vsyncpa [#allocation3], 1 }
  0x83   :  { %480 = vsyncpa [#allocation4], 1 }

</bundles_post_ra>
